<compile_context>
chip_gen: v5e
topology: v5e:2x2
jax: 0.10.0
libtpu: 0.0.40
codegen_flags: <defaults>
</compile_context>

<pallas_src>
import math

import jax
import jax.numpy as jnp
from jax.experimental import pallas as pl
from jax.experimental.pallas import tpu as pltpu


def _round_up(v, m):
    return -(-v // m) * m


def _make_kernel(groups_per_step, rows_per_group, n_valid_rows):
    rg = rows_per_group
    rb = groups_per_step * rg

    def kernel(eye_ref, blk_ref, x_ref, out_ref):
        eye = eye_ref[...]                     # (rg, rg) f32: 1.0 on the diagonal
        blk = blk_ref[...]                     # (rg, rg) f32: 1.0 where same batch
        row = jax.lax.broadcasted_iota(jnp.int32, (rg, rg), 0)
        base = pl.program_id(0) * rb

        total = jnp.float32(0.0)
        # Static unroll over the VMEM-resident groups of this tile: one big,
        # lane-dense DMA per grid step, one MXU-wide gram per group.
        for g in range(groups_per_step):
            xg = x_ref[g * rg:(g + 1) * rg, :]           # (rg, N_pad), input dtype
            gram = jax.lax.dot_general(                   # (rg, rg) f32 accumulate
                xg, xg, (((1,), (1,)), ((), ())),
                preferred_element_type=jnp.float32)

            # Row norms from the gram diagonal.  F.normalize semantics:
            # x / max(||x||, 1e-12)  ==  x * rsqrt(max(||x||^2, 1e-24)).
            d = gram * eye
            inv_c = jax.lax.rsqrt(
                jnp.maximum(jnp.sum(d, axis=1, keepdims=True), 1e-24))   # (rg, 1)
            inv_r = jax.lax.rsqrt(
                jnp.maximum(jnp.sum(d, axis=0, keepdims=True), 1e-24))   # (1, rg)

            diff = gram * inv_c * inv_r - eye
            # Keep only within-batch entries, and drop rows that were added by
            # the batch padding in the wrapper (blocks are whole batches, so a
            # row-validity check is sufficient).
            keep = (row + (base + g * rg)) < n_valid_rows
            total = total + jnp.sum(jnp.where(keep, diff * diff * blk, 0.0))

        out_ref[0, 0] = total

    return kernel


def orthonormality_loss(attentions, *, mxu_rows=256, target_tile_bytes=8 << 20,
                        cast_to_bf16=False):
    """attentions: (B, S, *spatial) array.  Returns scalar f32 loss.

    mxu_rows: rows per gram group (Bg*S); ~256 for v6e/v7x, use 128 on v5e.
    cast_to_bf16: optionally stream bf16 (halves HBM traffic; slight numerics
      change vs. the f32 PyTorch reference), per perf feedback. Default off.
    """
    B, S = int(attentions.shape[0]), int(attentions.shape[1])
    if S < 2:
        raise ValueError("OrthonormalityLoss requires size >= 2 (S*(S-1) scale).")
    N = math.prod(attentions.shape[2:]) if attentions.ndim > 2 else 1
    x = attentions.reshape(B, S, N)
    if cast_to_bf16 and x.dtype == jnp.float32:
        x = x.astype(jnp.bfloat16)
    itemsize = x.dtype.itemsize

    # Zero-pad the feature dim to a lane-dense multiple of 128 (zeros change
    # neither the row norms nor the gram).
    n_pad = _round_up(N, 128)

    # Batches per gram group: Bg*S ~ mxu_rows, with Bg*S a multiple of 8 so the
    # row-block shape satisfies the (8, 128) tiling constraint.
    m = 8 // math.gcd(S, 8)
    bg = max(1, mxu_rows // S)
    bg = max(m, (bg // m) * m)
    bg = min(bg, _round_up(B, m))
    rg = bg * S                                    # rows per gram group

    n_groups = -(-B // bg)
    group_bytes = rg * n_pad * itemsize
    gps = max(1, min(n_groups, target_tile_bytes // group_bytes, 32))
    if n_groups >= 2:                              # keep >= 2 grid steps (v7x 2 TCs)
        gps = min(gps, -(-n_groups // 2))
    n_tiles = -(-n_groups // gps)
    rb = gps * rg                                  # rows per grid step

    total_rows = n_tiles * rb
    n_valid = B * S

    x2 = x.reshape(B * S, N)
    x2 = jnp.pad(x2, ((0, total_rows - n_valid), (0, n_pad - N)))

    # Precomputed f32 masks (avoids in-kernel integer division): identity and
    # same-batch (block-diagonal) masks for one (rg, rg) group gram.
    ids = jnp.arange(rg, dtype=jnp.int32)
    eye = (ids[:, None] == ids[None, :]).astype(jnp.float32)
    blk = ((ids[:, None] // S) == (ids[None, :] // S)).astype(jnp.float32)

    est = (2 * rb * n_pad * itemsize               # double-buffered input slab
           + 4 * rg * rg * 4                       # eye/blk (double-buffered)
           + 8 * rg * rg * 4                       # gram + temporaries
           + (4 << 20))                            # headroom
    vmem_limit = int(min(56 << 20, max(est, 8 << 20)))

    partials = pl.pallas_call(
        _make_kernel(gps, rg, n_valid),
        out_shape=jax.ShapeDtypeStruct((n_tiles, 1), jnp.float32),
        grid=(n_tiles,),
        in_specs=[
            pl.BlockSpec((rg, rg), lambda i: (0, 0)),        # eye mask
            pl.BlockSpec((rg, rg), lambda i: (0, 0)),        # same-batch mask
            pl.BlockSpec((rb, n_pad), lambda i: (i, 0)),     # input rows
        ],
        out_specs=pl.BlockSpec((1, 1), lambda i: (i, 0), memory_space=pltpu.SMEM),
        compiler_params=pltpu.CompilerParams(
            dimension_semantics=("parallel",),
            vmem_limit_bytes=vmem_limit,
        ),
    )(eye, blk, x2)

    # Tiny final reduction + scale in the wrapper (keeps the grid axis truly
    # parallel; no loop-carried accumulator).
    return 2.0 * jnp.sum(partials) / (S * (S - 1.0))


def _reference(attentions):
    B, S = attentions.shape[0], attentions.shape[1]
    x = attentions.reshape(B, S, -1).astype(jnp.float32)
    norm = jnp.sqrt(jnp.sum(x * x, axis=2, keepdims=True))
    x = x / jnp.maximum(norm, 1e-12)
    gram = jnp.einsum("bsn,btn->bst", x, x)
    diff = gram - jnp.eye(S, dtype=jnp.float32)[None]
    return 2.0 * jnp.sum(diff ** 2) / (S * (S - 1.0))


if __name__ == "__main__":
    key = jax.random.PRNGKey(0)

    # Case 1: aligned shapes (B=2, S=4, 16x16 spatial).
    attn1 = jax.random.normal(key, (2, 4, 16, 16), dtype=jnp.float32)
    loss1 = jax.block_until_ready(orthonormality_loss(attn1))
    ref1 = _reference(attn1)

    # Case 2: awkward shapes to exercise batch/feature padding paths
    # (B=5 prime-ish, S=3 not a multiple of 8, 14x14 -> N=196 not lane-aligned).
    attn2 = jax.random.normal(jax.random.PRNGKey(1), (5, 3, 14, 14), dtype=jnp.float32)
    loss2 = jax.block_until_ready(orthonormality_loss(attn2))
    ref2 = _reference(attn2)

    # Tolerance note: with full-f32 matmuls on both sides agreement is ~1e-6;
    # rtol is kept at 1e-2 to also cover MXU bf16 input rounding (the kernel
    # normalizes via the gram diagonal, the reference normalizes first).
    assert jnp.allclose(loss1, ref1, rtol=1e-2, atol=1e-5), (loss1, ref1)
    assert jnp.allclose(loss2, ref2, rtol=1e-2, atol=1e-5), (loss2, ref2)
    print("KERNEL_OK")
</pallas_src>

<mosaic_0001>
module attributes {stable_mosaic.version = 11 : i64} {
  func.func @kernel(%arg0: i32, %arg1: memref<8x8xf32, #tpu.memory_space<vmem>>, %arg2: memref<8x8xf32, #tpu.memory_space<vmem>>, %arg3: memref<8x256xf32, #tpu.memory_space<vmem>>, %arg4: memref<1x1xf32, #tpu.memory_space<smem>>) attributes {dimension_semantics = [#tpu.dimension_semantics<parallel>], iteration_bounds = array<i64: 1>, scalar_prefetch = 0 : i64, scratch_operands = 0 : i64, tpu.core_type = #tpu.core_type<tc>, window_params = [{pipeline_mode = #tpu.pipeline_mode<synchronous>, transform_indices = @transform_0, window_bounds = array<i64: 8, 8>}, {pipeline_mode = #tpu.pipeline_mode<synchronous>, transform_indices = @transform_1, window_bounds = array<i64: 8, 8>}, {transform_indices = @transform_2, window_bounds = array<i64: 8, 256>}, {transform_indices = @transform_3, window_bounds = array<i64: 1, 1>}]} {
    %c0 = arith.constant 0 : index
    %c0_0 = arith.constant 0 : index
    %0 = vector.load %arg1[%c0, %c0_0] : memref<8x8xf32, #tpu.memory_space<vmem>>, vector<8x8xf32>
    %c0_1 = arith.constant 0 : index
    %c0_2 = arith.constant 0 : index
    %1 = vector.load %arg2[%c0_1, %c0_2] : memref<8x8xf32, #tpu.memory_space<vmem>>, vector<8x8xf32>
    %2 = tpu.iota {dimensions = array<i32: 0>} : vector<8x8xi32>
    %c8_i32 = arith.constant 8 : i32
    %3 = arith.muli %arg0, %c8_i32 : i32
    %c0_3 = arith.constant 0 : index
    %c0_4 = arith.constant 0 : index
    %4 = vector.load %arg3[%c0_3, %c0_4] : memref<8x256xf32, #tpu.memory_space<vmem>>, vector<8x256xf32>
    %cst = arith.constant dense<0.000000e+00> : vector<8x8xf32>
    %5 = tpu.matmul %4, %4, %cst {dimension_numbers = #tpu.dot_dimension_numbers<[1], [1], [0], [0], [0, 0, 1, 0], [], []>} : vector<8x256xf32>, vector<8x256xf32>, vector<8x8xf32> -> vector<8x8xf32>
    %6 = arith.mulf %5, %0 : vector<8x8xf32>
    %cst_5 = arith.constant dense<0.000000e+00> : vector<8xf32>
    %7 = vector.multi_reduction <add>, %6, %cst_5 [1] : vector<8x8xf32> to vector<8xf32>
    %8 = vector.shape_cast %7 : vector<8xf32> to vector<8x1xf32>
    %cst_6 = arith.constant 1.000000e-24 : f32
    %9 = vector.broadcast %cst_6 : f32 to vector<8x1xf32>
    %10 = arith.maximumf %8, %9 : vector<8x1xf32>
    %11 = math.rsqrt %10 : vector<8x1xf32>
    %cst_7 = arith.constant dense<0.000000e+00> : vector<8xf32>
    %12 = vector.multi_reduction <add>, %6, %cst_7 [0] : vector<8x8xf32> to vector<8xf32>
    %13 = vector.shape_cast %12 : vector<8xf32> to vector<1x8xf32>
    %cst_8 = arith.constant 1.000000e-24 : f32
    %14 = vector.broadcast %cst_8 : f32 to vector<1x8xf32>
    %15 = arith.maximumf %13, %14 : vector<1x8xf32>
    %16 = math.rsqrt %15 : vector<1x8xf32>
    %17 = vector.broadcast %11 : vector<8x1xf32> to vector<8x8xf32>
    %18 = arith.mulf %5, %17 : vector<8x8xf32>
    %19 = vector.broadcast %16 : vector<1x8xf32> to vector<8x8xf32>
    %20 = arith.mulf %18, %19 : vector<8x8xf32>
    %21 = arith.subf %20, %0 : vector<8x8xf32>
    %c0_i32 = arith.constant 0 : i32
    %22 = arith.addi %3, %c0_i32 : i32
    %23 = vector.broadcast %22 : i32 to vector<8x8xi32>
    %24 = arith.addi %2, %23 : vector<8x8xi32>
    %c8_i32_9 = arith.constant 8 : i32
    %25 = vector.broadcast %c8_i32_9 : i32 to vector<8x8xi32>
    %26 = arith.cmpi slt, %24, %25 : vector<8x8xi32>
    %27 = arith.mulf %21, %21 : vector<8x8xf32>
    %28 = arith.mulf %27, %1 : vector<8x8xf32>
    %cst_10 = arith.constant 0.000000e+00 : f32
    %29 = vector.broadcast %cst_10 : f32 to vector<8x8xf32>
    %30 = arith.select %26, %28, %29 : vector<8x8xi1>, vector<8x8xf32>
    %31 = vector.shape_cast %30 : vector<8x8xf32> to vector<1x8x8xf32>
    %cst_11 = arith.constant dense<0.000000e+00> : vector<1xf32>
    %32 = vector.multi_reduction <add>, %31, %cst_11 [1, 2] : vector<1x8x8xf32> to vector<1xf32>
    %33 = vector.shape_cast %32 : vector<1xf32> to vector<1x1x1xf32>
    %34 = vector.extract %33[0, 0, 0] : f32 from vector<1x1x1xf32>
    %cst_12 = arith.constant 0.000000e+00 : f32
    %35 = arith.addf %cst_12, %34 : f32
    %c0_13 = arith.constant 0 : index
    %c0_14 = arith.constant 0 : index
    %36 = memref.load %arg4[%c0_13, %c0_14] : memref<1x1xf32, #tpu.memory_space<smem>>
    memref.store %35, %arg4[%c0_13, %c0_14] : memref<1x1xf32, #tpu.memory_space<smem>>
    return
  }
  func.func @transform_0(%arg0: i32) -> (i32, i32) {
    %c0_i32 = arith.constant 0 : i32
    %c0_i32_0 = arith.constant 0 : i32
    %c0_i32_1 = arith.constant 0 : i32
    return %c0_i32, %c0_i32_0 : i32, i32
  }
  func.func @transform_1(%arg0: i32) -> (i32, i32) {
    %c0_i32 = arith.constant 0 : i32
    %c0_i32_0 = arith.constant 0 : i32
    %c0_i32_1 = arith.constant 0 : i32
    return %c0_i32, %c0_i32_0 : i32, i32
  }
  func.func @transform_2(%arg0: i32) -> (i32, i32) {
    %c0_i32 = arith.constant 0 : i32
    %c0_i32_0 = arith.constant 0 : i32
    return %arg0, %c0_i32 : i32, i32
  }
  func.func @transform_3(%arg0: i32) -> (i32, i32) {
    %c0_i32 = arith.constant 0 : i32
    %c0_i32_0 = arith.constant 0 : i32
    return %arg0, %c0_i32 : i32, i32
  }
}

</mosaic_0001>

<bundles_post_ra>
// kernel: tpu_custom_call.1
= control target key start
LH: loop header
LB: loop body
LE: loop exit
PB: predicated region body
PF: predicated region fallthrough
CT: control target
= control target key end

     0   :  { %8 = vsyncpa [#allocation3], 0  ;;  %s313_s0 = inlined_call_operand.hbm [shape: f32[8,8], index: 0, kind: input, shape index: {}]   ;;  %s314_s1 = inlined_call_operand.hbm [shape: f32[8,8], index: 1, kind: input, shape index: {}]   ;;  %s315_s2 = inlined_call_operand.hbm [shape: f32[8,256], index: 2, kind: input, shape index: {}]   ;;  %s316_s3 = inlined_call_operand.hbm [shape: f32[1,1], index: 3, kind: output, shape index: {}]  }
   0x1   :  { %9 = vsyncpa [#allocation6], 0  ;;  %s27_s14 = sshll.u32 %s314_s1, 4  ;;  %s28_s14 = int_to_ptr.hbm [resolvable:$true] %s27_s14 }
   0x2   :  { %10 = vsyncpa [#allocation4], 0  ;;  %s275_s15 = smov [#allocation5]   ;;  %s16_s19 = sshll.u32 %s313_s0, 4  ;;  %s17_s19 = int_to_ptr.hbm [resolvable:$true] %s16_s19 }
   0x3   :  { %s29_s16 = sshll.u32 %s275_s15, 4  ;;  %s276_s20 = smov [#allocation2]   ;;  %s30_s16 = int_to_ptr.vmem [resolvable:$true] %s29_s16 }
   0x4   :  { %32 = dma.hbm_to_vmem [thread:$0]  %s28_s14, 128, %s30_s16, [#allocation6]  }
   0x5   :  { %s18_s21 = sshll.u32 %s276_s20, 4  ;;  %s38_s24 = sshll.u32 %s315_s2, 4  ;;  %s19_s21 = int_to_ptr.vmem [resolvable:$true] %s18_s21  ;;  %s39_s24 = int_to_ptr.hbm [resolvable:$true] %s38_s24 }
   0x6   :  { %21 = dma.hbm_to_vmem [thread:$0]  %s17_s19, 128, %s19_s21, [#allocation3]  }
   0x7   :  { %s277_s1 = smov [#allocation7]  }
   0x8   :  { %s40_s25 = sshll.u32 %s277_s1, 4  ;;  %s41_s25 = int_to_ptr.vmem [resolvable:$true] %s40_s25 }
   0x9   :  { %43 = dma.hbm_to_vmem [thread:$0]  %s39_s24, 256, %s41_s25, [#allocation6]  }
   0xa   :  { %269 = dma.done.wait [#allocation3], 128  }
   0xb   :  { %270 = vsyncadd [#allocation3], 4294967168 }
   0xc   :  { %271 = dma.done.wait [#allocation6], 384  }
   0xd   :  { %272 = vsyncadd [#allocation6], 4294966912  ;;  %v61_v0 = vld [vmem:[#allocation7] sm:$0xff]  ;;  %v62_v1 = vld [vmem:[#allocation7 + $0x8] sm:$0xff]  ;;  %vm104_vm0 = vcmask 64512   ;;  %s163_s26 = sshll.u32 %s316_s3, 4  ;;  %s164_s26 = int_to_ptr.hbm [resolvable:$true] %s163_s26 }
   0xe   :  { %78 = vmatpush.xpose.msra.mxu0 %v61_v0  ;;  %98 = vmatpush.xpose.msra.mxu1 %v62_v1  ;;  %v56_v3 = vld [vmem:[#allocation2] sm:$0xff]  ;;  %v57_v34 = vld [vmem:[#allocation5] sm:$0xff]  ;;  %s278_s28 = smov [#allocation8]  }
  0x11   :  { %79 = vmatmul.f32.vlgmr.msra.gmra.mxu0 %v61_v0  ;;  %99 = vmatmul.f32.vlgmr.msra.gmra.mxu1 %v62_v1 }
  0x8e   :  { %v80_v2 = vpop.f32.mrf.mxu0  ;;  %v100_v4 = vpop.f32.mrf.mxu1 }
  0x8f   :  { %v101_v5 = vadd.f32 %v100_v4, %v80_v2 }
  0x91   :  { %v103_v6 = vmul.f32 %v101_v5, %v56_v3 }
  0x93   :  { %v105_v7 = vsel %vm104_vm0, %v103_v6, 0.0 }
  0x94   :  { %106 = vadd.xlane.f32.xlu0 %v105_v7  ;;  %v119_v8 = vrot.slane %v105_v7, 4 }
  0x96   :  { %v120_v9 = vadd.f32 %v119_v8, %v105_v7 }
  0x98   :  { %v121_v10 = vrot.slane %v120_v9, 2 }
  0x9a   :  { %v122_v11 = vadd.f32 %v121_v10, %v120_v9 }
  0x9c   :  { %v123_v12 = vrot.slane %v122_v11, 1 }
  0x9e   :  { %v124_v13 = vadd.f32 %v123_v12, %v122_v11 }
  0xa0   :  { %v125_v14 = vmax.f32 %v124_v13, 1e-24 }
  0xa2   :  { %181 = vrsqrt.f32 %v125_v14  ;;  %vm132_vm5 = vweird.f32 %v125_v14 }
  0xa8   :  { %v182_v15 = vpop.eup %181 }
  0xa9   :  { %v127_v18 = vmul.f32 %v182_v15, %v125_v14  ;;  %vm133_vm3 = vweird.f32 %v182_v15 }
  0xaa   :  { %vm134_vm6 = vmor %vm132_vm5, %vm133_vm3 }
  0xab   :  { %v128_v19 = vmul.f32 %v182_v15, %v127_v18 }
  0xad   :  { %v129_v22 = vmul.f32 0.5, %v128_v19 }
  0xaf   :  { %v130_v25 = vsub.f32 1.5, %v129_v22 }
  0xb1   :  { %v131_v28 = vmul.f32 %v182_v15, %v130_v25 }
  0xb3   :  { %v135_v31 = vsel %vm134_vm6, %v182_v15, %v131_v28 }
 0x107   :  { %v107_v16 = vpop.xlane.xlu0 %106 }
 0x108   :  { %v108_v17 = vmax.f32 %v107_v16, 1e-24 }
 0x10a   :  { %183 = vrsqrt.f32 %v108_v17  ;;  %vm115_vm2 = vweird.f32 %v108_v17 }
 0x110   :  { %v184_v20 = vpop.eup %183 }
 0x111   :  { %v110_v21 = vmul.f32 %v184_v20, %v108_v17  ;;  %vm116_vm1 = vweird.f32 %v184_v20 }
 0x112   :  { %vm117_vm4 = vmor %vm115_vm2, %vm116_vm1 }
 0x113   :  { %v111_v23 = vmul.f32 %v184_v20, %v110_v21 }
 0x115   :  { %v112_v24 = vmul.f32 0.5, %v111_v23 }
 0x117   :  { %v113_v26 = vsub.f32 1.5, %v112_v24 }
 0x119   :  { %v114_v27 = vmul.f32 %v184_v20, %v113_v26 }
 0x11b   :  { %v118_v29 = vsel %vm117_vm4, %v184_v20, %v114_v27 }
 0x11c   :  { %v136_v30 = vmul.f32 %v118_v29, %v101_v5 }
 0x11e   :  { %v137_v32 = vmul.f32 %v136_v30, %v135_v31 }
 0x120   :  { %v138_v33 = vsub.f32 %v137_v32, %v56_v3 }
 0x122   :  { %v142_v35 = vmul.f32 %v138_v33, %v138_v33 }
 0x124   :  { %v143_v36 = vmul.f32 %v142_v35, %v57_v34 }
 0x126   :  { %v145_v37 = vsel %vm104_vm0, %v143_v36, 0.0 }
 0x127   :  { %146 = vadd.xlane.f32.xlu0 %v145_v37 }
 0x19a   :  { %v147_v38 = vpop.xlane.xlu0 %146 }
 0x19b   :  { %v148_v39 = vrot.slane %v147_v38, 4 }
 0x19d   :  { %v149_v40 = vadd.f32 %v148_v39, %v147_v38 }
 0x19f   :  { %v150_v41 = vrot.slane %v149_v40, 2 }
 0x1a1   :  { %v151_v42 = vadd.f32 %v150_v41, %v149_v40 }
 0x1a3   :  { %v152_v43 = vrot.slane %v151_v42, 1 }
 0x1a5   :  { %v153_v44 = vadd.f32 %v152_v43, %v151_v42 }
 0x1a7   :  { %175 = vpush %v153_v44 }
 0x1d8   :  { %s176_s27 = spop %175 }
 0x1d9   :  { %157 = sst [smem:[#allocation8]] %s176_s27 }
 0x1da   :  { %166 = dma.smem_to_hbm %s278_s28, 16, %s164_s26, [#allocation4]  }
 0x1db   :  { %273 = dma.done.wait [#allocation4], 16  }
 0x1dc   :  { %274 = vsyncadd [#allocation4], 4294967280 }
 0x1dd   :  { %171 = sfence }
 0x1de   :  { %172 = vsyncpa [#allocation3], 1 }
 0x1df   :  { %173 = vsyncpa [#allocation6], 1 }
 0x1e0   :  { %174 = vsyncpa [#allocation4], 1 }

</bundles_post_ra>
